<compile_context>
chip_gen: v6e
topology: v6e:2x2x1
jax: 0.10.0
libtpu: 0.0.40
codegen_flags: <defaults>
</compile_context>

<pallas_src>
import jax
import jax.numpy as jnp
from jax.experimental import pallas as pl
from jax.experimental.pallas import tpu as pltpu  # noqa: F401  (TPU backend)

ADAPT_DIM = 32          # module's adapt_dim
N_LANES = 128           # vreg lane width on v5e/v6e/v7x
H1, H2, OUT = 64, 32, 4  # true (unpadded) layer widths
PACKED_ROWS = 3 * N_LANES + 8  # W1 | W2 | W3 | bias tile (8 rows)  -> 392


def _adaptive_config_kernel(x_ref, p_ref, o_ref):
    # Static slices of the packed VMEM param buffer (zero runtime cost).
    w1 = p_ref[0:128, :]            # (128,128)  rows 0..31  hold real W1
    w2 = p_ref[128:256, :]          # (128,128)  rows 0..63  hold real W2
    w3 = p_ref[256:384, :]          # (128,128)  rows 0..31  hold real W3
    bias_blk = p_ref[384:392, :]    # (8,128) aligned load; rows 0..2 = b1,b2,b3
    b1 = bias_blk[0:1, :]
    b2 = bias_blk[1:2, :]
    b3 = bias_blk[2:3, :]

    x = x_ref[...]                                                     # (1,128)
    h1 = jnp.maximum(jnp.dot(x, w1, preferred_element_type=jnp.float32) + b1, 0.0)
    h2 = jnp.maximum(jnp.dot(h1, w2, preferred_element_type=jnp.float32) + b2, 0.0)
    o = jnp.dot(h2, w3, preferred_element_type=jnp.float32) + b3       # (1,128)

    # Fold int() truncation (f32->s32 rounds toward zero) + max() clamps into
    # the kernel: per-lane minimums are [1, 2, 1, 16, 1, 1, ...].
    lane = jax.lax.broadcasted_iota(jnp.int32, o.shape, 1)
    mins = jnp.where(lane == 3, 16, jnp.where(lane == 1, 2, 1))
    o_ref[...] = jnp.maximum(o.astype(jnp.int32), mins)


@jax.jit
def _config_forward_device(adapt_input, packed_params):
    """Pad the input to lane width, run the fused MLP kernel, slice 4 lanes."""
    x_pad = (
        jnp.zeros((1, N_LANES), jnp.float32)
        .at[0, : adapt_input.shape[-1]]
        .set(adapt_input.astype(jnp.float32))
    )
    cfg = pl.pallas_call(
        _adaptive_config_kernel,
        out_shape=jax.ShapeDtypeStruct((1, N_LANES), jnp.int32),
        grid=(),  # tiny problem: single invocation, everything resident in VMEM
        in_specs=[
            pl.BlockSpec((1, N_LANES), lambda: (0, 0)),
            pl.BlockSpec((PACKED_ROWS, N_LANES), lambda: (0, 0)),
        ],
        out_specs=pl.BlockSpec((1, N_LANES), lambda: (0, 0)),
    )(x_pad, packed_params)
    return cfg[0, :4]  # int32, already truncated + clamped


def pack_params(w1, b1, w2, b2, w3, b3):
    """Pack weights (stored as (in,out), i.e. PyTorch W.T) + biases into one
    lane-dense, zero-padded f32 (392,128) buffer. Done once at init time."""
    packed = jnp.zeros((PACKED_ROWS, N_LANES), jnp.float32)
    packed = packed.at[0 : w1.shape[0], 0 : w1.shape[1]].set(w1.astype(jnp.float32))
    packed = packed.at[128 : 128 + w2.shape[0], 0 : w2.shape[1]].set(w2.astype(jnp.float32))
    packed = packed.at[256 : 256 + w3.shape[0], 0 : w3.shape[1]].set(w3.astype(jnp.float32))
    packed = packed.at[384, 0 : b1.shape[0]].set(b1.astype(jnp.float32))
    packed = packed.at[385, 0 : b2.shape[0]].set(b2.astype(jnp.float32))
    packed = packed.at[386, 0 : b3.shape[0]].set(b3.astype(jnp.float32))
    return packed


def init_params(key, adapt_dim):
    """Deterministic init mimicking nn.Linear (uniform +-1/sqrt(fan_in)).
    Weights are stored transposed relative to PyTorch: (in_features, out_features)."""
    dims = [(adapt_dim, H1), (H1, H2), (H2, OUT)]
    params = []
    for fan_in, fan_out in dims:
        key, kw, kb = jax.random.split(key, 3)
        bound = 1.0 / jnp.sqrt(fan_in)
        w = jax.random.uniform(kw, (fan_in, fan_out), jnp.float32, -bound, bound)
        b = jax.random.uniform(kb, (fan_out,), jnp.float32, -bound, bound)
        params.extend([w, b])
    return params


def adaptive_configuration_forward(adapt_input, packed_params):
    """Full module forward: returns the dict of Python ints, like PyTorch.
    Trunc/clamp happen on device; host just converts 4 int32s."""
    cfg = jax.device_get(_config_forward_device(adapt_input, packed_params))
    # TODO(synk): returning Dict[str, int] forces a host sync; keep cfg on
    # device if the caller can consume the int32 vector directly.
    return {
        "max_recursion": int(cfg[0]),
        "num_experts": int(cfg[1]),
        "num_layers": int(cfg[2]),
        "hidden_dim": int(cfg[3]),
    }


if __name__ == "__main__":
    key = jax.random.PRNGKey(0)
    key, k_in = jax.random.split(key)

    raw_params = init_params(key, ADAPT_DIM)
    w1, b1, w2, b2, w3, b3 = raw_params
    packed = pack_params(*raw_params)
    packed = jax.device_put(packed)  # params live on device in kernel layout

    def reference_dict(x):
        h1 = jnp.maximum(x @ w1 + b1, 0.0)
        h2 = jnp.maximum(h1 @ w2 + b2, 0.0)
        o = jax.device_get(h2 @ w3 + b3)
        return {
            "max_recursion": max(1, int(o[0])),  # int() truncates toward zero
            "num_experts": max(2, int(o[1])),
            "num_layers": max(1, int(o[2])),
            "hidden_dim": max(16, int(o[3])),
        }

    # Run the Pallas path on a few deterministic inputs and cross-check against
    # the pure-JAX reference (same jit-compiled kernel reused each call).
    for i in range(3):
        k_in, k_cur = jax.random.split(k_in)
        adapt_input = jax.random.normal(k_cur, (ADAPT_DIM,), jnp.float32) * (1.0 + i)

        got_vec = jax.block_until_ready(_config_forward_device(adapt_input, packed))
        result = adaptive_configuration_forward(adapt_input, packed)
        ref = reference_dict(adapt_input)

        assert result == ref, (result, ref)
        assert result["max_recursion"] >= 1
        assert result["num_experts"] >= 2
        assert result["num_layers"] >= 1
        assert result["hidden_dim"] >= 16
        assert all(isinstance(v, int) for v in result.values())
        assert got_vec.dtype == jnp.int32 and got_vec.shape == (4,)

    print("KERNEL_OK")
</pallas_src>

<mosaic_0001>
module attributes {stable_mosaic.version = 11 : i64} {
  func.func @_adaptive_config_kernel(%arg0: memref<1x128xf32, #tpu.memory_space<vmem>>, %arg1: memref<392x128xf32, #tpu.memory_space<vmem>>, %arg2: memref<1x128xi32, #tpu.memory_space<vmem>>) attributes {dimension_semantics = [], scalar_prefetch = 0 : i64, scratch_operands = 0 : i64, tpu.core_type = #tpu.core_type<tc>} {
    %c0 = arith.constant 0 : index
    %c0_0 = arith.constant 0 : index
    %0 = vector.load %arg1[%c0, %c0_0] : memref<392x128xf32, #tpu.memory_space<vmem>>, vector<128x128xf32>
    %c128 = arith.constant 128 : index
    %c0_1 = arith.constant 0 : index
    %1 = vector.load %arg1[%c128, %c0_1] : memref<392x128xf32, #tpu.memory_space<vmem>>, vector<128x128xf32>
    %c256 = arith.constant 256 : index
    %c0_2 = arith.constant 0 : index
    %2 = vector.load %arg1[%c256, %c0_2] : memref<392x128xf32, #tpu.memory_space<vmem>>, vector<128x128xf32>
    %c384 = arith.constant 384 : index
    %c0_3 = arith.constant 0 : index
    %3 = vector.load %arg1[%c384, %c0_3] : memref<392x128xf32, #tpu.memory_space<vmem>>, vector<8x128xf32>
    %4 = vector.extract_strided_slice %3 {offsets = [0, 0], sizes = [1, 128], strides = [1, 1]} : vector<8x128xf32> to vector<1x128xf32>
    %5 = vector.extract_strided_slice %3 {offsets = [1, 0], sizes = [1, 128], strides = [1, 1]} : vector<8x128xf32> to vector<1x128xf32>
    %6 = vector.extract_strided_slice %3 {offsets = [2, 0], sizes = [1, 128], strides = [1, 1]} : vector<8x128xf32> to vector<1x128xf32>
    %c0_4 = arith.constant 0 : index
    %c0_5 = arith.constant 0 : index
    %7 = vector.load %arg0[%c0_4, %c0_5] : memref<1x128xf32, #tpu.memory_space<vmem>>, vector<1x128xf32>
    %cst = arith.constant dense<0.000000e+00> : vector<1x128xf32>
    %8 = tpu.matmul %7, %0, %cst {dimension_numbers = #tpu.dot_dimension_numbers<[1], [0], [0], [1], [0, 0, 1, 1], [], []>} : vector<1x128xf32>, vector<128x128xf32>, vector<1x128xf32> -> vector<1x128xf32>
    %9 = arith.addf %8, %4 : vector<1x128xf32>
    %cst_6 = arith.constant 0.000000e+00 : f32
    %10 = vector.broadcast %cst_6 : f32 to vector<1x128xf32>
    %11 = arith.maximumf %9, %10 : vector<1x128xf32>
    %cst_7 = arith.constant dense<0.000000e+00> : vector<1x128xf32>
    %12 = tpu.matmul %11, %1, %cst_7 {dimension_numbers = #tpu.dot_dimension_numbers<[1], [0], [0], [1], [0, 0, 1, 1], [], []>} : vector<1x128xf32>, vector<128x128xf32>, vector<1x128xf32> -> vector<1x128xf32>
    %13 = arith.addf %12, %5 : vector<1x128xf32>
    %cst_8 = arith.constant 0.000000e+00 : f32
    %14 = vector.broadcast %cst_8 : f32 to vector<1x128xf32>
    %15 = arith.maximumf %13, %14 : vector<1x128xf32>
    %cst_9 = arith.constant dense<0.000000e+00> : vector<1x128xf32>
    %16 = tpu.matmul %15, %2, %cst_9 {dimension_numbers = #tpu.dot_dimension_numbers<[1], [0], [0], [1], [0, 0, 1, 1], [], []>} : vector<1x128xf32>, vector<128x128xf32>, vector<1x128xf32> -> vector<1x128xf32>
    %17 = arith.addf %16, %6 : vector<1x128xf32>
    %18 = tpu.iota {dimensions = array<i32: 1>} : vector<1x128xi32>
    %c3_i32 = arith.constant 3 : i32
    %19 = vector.broadcast %c3_i32 : i32 to vector<1x128xi32>
    %20 = arith.cmpi eq, %18, %19 : vector<1x128xi32>
    %c1_i32 = arith.constant 1 : i32
    %21 = vector.broadcast %c1_i32 : i32 to vector<1x128xi32>
    %22 = arith.cmpi eq, %18, %21 : vector<1x128xi32>
    %c2_i32 = arith.constant 2 : i32
    %c1_i32_10 = arith.constant 1 : i32
    %23 = vector.broadcast %c2_i32 : i32 to vector<1x128xi32>
    %24 = vector.broadcast %c1_i32_10 : i32 to vector<1x128xi32>
    %25 = arith.select %22, %23, %24 : vector<1x128xi1>, vector<1x128xi32>
    %c16_i32 = arith.constant 16 : i32
    %26 = vector.broadcast %c16_i32 : i32 to vector<1x128xi32>
    %27 = arith.select %20, %26, %25 : vector<1x128xi1>, vector<1x128xi32>
    %28 = arith.fptosi %17 : vector<1x128xf32> to vector<1x128xi32>
    %29 = arith.maxsi %28, %27 : vector<1x128xi32>
    %c0_11 = arith.constant 0 : index
    %c0_12 = arith.constant 0 : index
    %30 = vector.load %arg2[%c0_11, %c0_12] : memref<1x128xi32, #tpu.memory_space<vmem>>, vector<1x128xi32>
    tpu.vector_store %arg2[%c0_11, %c0_12], %29 {strides = array<i32>} : memref<1x128xi32, #tpu.memory_space<vmem>>, vector<1x128xi32>,
    return
  }
}

</mosaic_0001>

<bundles_post_ra>
// kernel: _config_forward_device.1
= control target key start
LH: loop header
LB: loop body
LE: loop exit
PB: predicated region body
PF: predicated region fallthrough
CT: control target
= control target key end

     0   :  { %7 = vsyncpa [#allocation3], 0  ;;  %s493_s9 = smov [#allocation2]   ;;  %s577_s0 = inlined_call_operand.vmem [shape: f32[1,128], index: 0, kind: input, shape index: {}]   ;;  %s578_s1 = inlined_call_operand.hbm [shape: f32[392,128], index: 1, kind: input, shape index: {}]   ;;  %s579_s2 = inlined_call_operand.vmem [shape: s32[1,128], index: 2, kind: output, shape index: {}]  }
   0x1   :  { %s15_s10 = sshll.u32 %s493_s9, 4  ;;  %s16_s10 = int_to_ptr.vmem [resolvable:$true] %s15_s10 }
   0x2   :  { %s479_s11 = scalar_lea.vmem %s16_s10, 6272  ;;  %p484_p1 = scmp.lt.s32.totalorder %s16_s10, %s16_s10 }
   0x3   :  { %p480_p0 = scmp.ne.s32.totalorder %s16_s10, %s479_s11  ;;  %p485_p2 = scmp.lt.s32.totalorder %s479_s11, %s479_s11 }
   0x5   :  { %p486_p3 = por %p485_p2, %p484_p1 }
   0x7   :  { %p487_p4 = pnand %p486_p3, %p480_p0 }
   0x9   :  { %490 = shalt.err (!%p487_p4)
}
   0xa   :  { %s494_s12 = smov 128   ;;  %s495_s13 = smov 8  }
   0xb   :  { %21 = dma.hbm_to_vmem [thread:$0]  %s578_s1, 6272, %s16_s10, [#allocation3], %s494_s12, %s494_s12, %s495_s13  }
   0xc   :  { %491 = dma.done.wait [#allocation3], 6272  }
   0xd   :  { %492 = vsyncadd [#allocation3], 4294961024  ;;  %v496_v0 = vmov 0.0   ;;  %vm497_vm0 = vmmov 0   ;;  %v40_v1 = vld [vmem:[#allocation2 + $0x78] sm:$0xff]  ;;  %v39_v2 = vld [vmem:[#allocation2 + $0x70] sm:$0xff]  ;;  %v292_v60 = vlaneseq }
   0xe   :  { %358 = vmatprep.subr.mxu0 %v496_v0  ;;  %390 = vmatprep.mubr.msk.f32.mxu0 %vm497_vm0, %v496_v0  ;;  %v38_v3 = vld [vmem:[#allocation2 + $0x68] sm:$0xff]  ;;  %v37_v4 = vld [vmem:[#allocation2 + $0x60] sm:$0xff]  ;;  %v56_v5 = vld [vmem:[#allocation2 + $0xf8] sm:$0xff] }
   0xf   :  { %393 = vmatprep.subr.mxu1 %v496_v0  ;;  %425 = vmatprep.mubr.msk.f32.mxu1 %vm497_vm0, %v496_v0  ;;  %v36_v6 = vld [vmem:[#allocation2 + $0x58] sm:$0xff]  ;;  %v55_v7 = vld [vmem:[#allocation2 + $0xf0] sm:$0xff]  ;;  %v54_v8 = vld [vmem:[#allocation2 + $0xe8] sm:$0xff]  ;;  %v293_v61 = vand.u32 127, %v292_v60 }
  0x10   :  { %359 = vmatpush3.msra.mxu0 %v40_v1  ;;  %394 = vmatpush3.msra.mxu1 %v56_v5  ;;  %v35_v9 = vld [vmem:[#allocation2 + $0x50] sm:$0xff]  ;;  %v53_v10 = vld [vmem:[#allocation2 + $0xe0] sm:$0xff]  ;;  %v34_v11 = vld [vmem:[#allocation2 + $0x48] sm:$0xff] }
  0x11   :  { %360 = vmatprep.subr.mxu0 %v496_v0  ;;  %395 = vmatprep.subr.mxu1 %v496_v0  ;;  %v52_v12 = vld [vmem:[#allocation2 + $0xd8] sm:$0xff]  ;;  %v33_v13 = vld [vmem:[#allocation2 + $0x40] sm:$0xff]  ;;  %v51_v14 = vld [vmem:[#allocation2 + $0xd0] sm:$0xff]  ;;  %vm295_vm1 = vcmp.eq.s32.totalorder %v293_v61, 1  ;;  %vm294_vm2 = vcmp.eq.s32.totalorder %v293_v61, 3 }
  0x12   :  { %361 = vmatpush3.msra.mxu0 %v39_v2  ;;  %396 = vmatpush3.msra.mxu1 %v55_v7  ;;  %v32_v15 = vld [vmem:[#allocation2 + $0x38] sm:$0xff]  ;;  %v50_v16 = vld [vmem:[#allocation2 + $0xc8] sm:$0xff]  ;;  %v31_v17 = vld [vmem:[#allocation2 + $0x30] sm:$0xff]  ;;  %v498_v2 = vmov 1  }
  0x13   :  { %362 = vmatprep.subr.mxu0 %v496_v0  ;;  %397 = vmatprep.subr.mxu1 %v496_v0  ;;  %v49_v18 = vld [vmem:[#allocation2 + $0xc0] sm:$0xff]  ;;  %v30_v19 = vld [vmem:[#allocation2 + $0x28] sm:$0xff]  ;;  %v48_v20 = vld [vmem:[#allocation2 + $0xb8] sm:$0xff] }
  0x14   :  { %363 = vmatpush3.msra.mxu0 %v38_v3  ;;  %398 = vmatpush3.msra.mxu1 %v54_v8  ;;  %v29_v21 = vld [vmem:[#allocation2 + $0x20] sm:$0xff]  ;;  %v47_v22 = vld [vmem:[#allocation2 + $0xb0] sm:$0xff]  ;;  %v28_v23 = vld [vmem:[#allocation2 + $0x18] sm:$0xff]  ;;  %v296_v3 = vsel %vm295_vm1, 2, %v498_v2 }
  0x15   :  { %364 = vmatprep.subr.mxu0 %v496_v0  ;;  %399 = vmatprep.subr.mxu1 %v496_v0  ;;  %v46_v24 = vld [vmem:[#allocation2 + $0xa8] sm:$0xff]  ;;  %v27_v25 = vld [vmem:[#allocation2 + $0x10] sm:$0xff]  ;;  %v45_v26 = vld [vmem:[#allocation2 + $0xa0] sm:$0xff] }
  0x16   :  { %365 = vmatpush3.msra.mxu0 %v37_v4  ;;  %400 = vmatpush3.msra.mxu1 %v53_v10  ;;  %v26_v27 = vld [vmem:[#allocation2 + $0x8] sm:$0xff]  ;;  %v44_v28 = vld [vmem:[#allocation2 + $0x98] sm:$0xff]  ;;  %v25_v29 = vld [vmem:[#allocation2] sm:$0xff] }
  0x17   :  { %366 = vmatprep.subr.mxu0 %v496_v0  ;;  %401 = vmatprep.subr.mxu1 %v496_v0  ;;  %v74_v30 = vld [vmem:[%s577_s0] sm:$0x1]  ;;  %v43_v31 = vld [vmem:[#allocation2 + $0x90] sm:$0xff]  ;;  %v42_v32 = vld [vmem:[#allocation2 + $0x88] sm:$0xff] }
  0x18   :  { %367 = vmatpush3.msra.mxu0 %v36_v6  ;;  %402 = vmatpush3.msra.mxu1 %v52_v12  ;;  %v41_v33 = vld [vmem:[#allocation2 + $0x80] sm:$0xff]  ;;  %v72_v34 = vld [vmem:[#allocation2 + $0x178] sm:$0xff]  ;;  %v71_v35 = vld [vmem:[#allocation2 + $0x170] sm:$0xff] }
  0x19   :  { %368 = vmatprep.subr.mxu0 %v496_v0  ;;  %403 = vmatprep.subr.mxu1 %v496_v0  ;;  %v70_v36 = vld [vmem:[#allocation2 + $0x168] sm:$0xff]  ;;  %v69_v37 = vld [vmem:[#allocation2 + $0x160] sm:$0xff]  ;;  %v68_v38 = vld [vmem:[#allocation2 + $0x158] sm:$0xff] }
  0x1a   :  { %369 = vmatpush3.msra.mxu0 %v35_v9  ;;  %404 = vmatpush3.msra.mxu1 %v51_v14  ;;  %v67_v39 = vld [vmem:[#allocation2 + $0x150] sm:$0xff]  ;;  %v66_v40 = vld [vmem:[#allocation2 + $0x148] sm:$0xff]  ;;  %v65_v41 = vld [vmem:[#allocation2 + $0x140] sm:$0xff] }
  0x1b   :  { %370 = vmatprep.subr.mxu0 %v496_v0  ;;  %405 = vmatprep.subr.mxu1 %v496_v0  ;;  %v64_v42 = vld [vmem:[#allocation2 + $0x138] sm:$0xff]  ;;  %v63_v43 = vld [vmem:[#allocation2 + $0x130] sm:$0xff]  ;;  %v62_v44 = vld [vmem:[#allocation2 + $0x128] sm:$0xff] }
  0x1c   :  { %371 = vmatpush3.msra.mxu0 %v34_v11  ;;  %406 = vmatpush3.msra.mxu1 %v50_v16  ;;  %v61_v45 = vld [vmem:[#allocation2 + $0x120] sm:$0xff]  ;;  %v60_v46 = vld [vmem:[#allocation2 + $0x118] sm:$0xff]  ;;  %v59_v52 = vld [vmem:[#allocation2 + $0x110] sm:$0xff] }
  0x1d   :  { %372 = vmatprep.subr.mxu0 %v496_v0  ;;  %407 = vmatprep.subr.mxu1 %v496_v0  ;;  %v73_v47 = vld [vmem:[#allocation2 + $0x180] sm:$0xff]  ;;  %v58_v53 = vld [vmem:[#allocation2 + $0x108] sm:$0xff] }
  0x1e   :  { %373 = vmatpush3.msra.mxu0 %v33_v13  ;;  %408 = vmatpush3.msra.mxu1 %v49_v18  ;;  %v57_v54 = vld [vmem:[#allocation2 + $0x100] sm:$0xff]  ;;  %v147_v55 = vrot.slane %v73_v47, 1  ;;  %v220_v62 = vrot.slane %v73_v47, 2 }
  0x1f   :  { %374 = vmatprep.subr.mxu0 %v496_v0  ;;  %409 = vmatprep.subr.mxu1 %v496_v0 }
  0x20   :  { %375 = vmatpush3.msra.mxu0 %v32_v15  ;;  %410 = vmatpush3.msra.mxu1 %v48_v20 }
  0x21   :  { %376 = vmatprep.subr.mxu0 %v496_v0  ;;  %411 = vmatprep.subr.mxu1 %v496_v0 }
  0x22   :  { %377 = vmatpush3.msra.mxu0 %v31_v17  ;;  %412 = vmatpush3.msra.mxu1 %v47_v22 }
  0x23   :  { %378 = vmatprep.subr.mxu0 %v496_v0  ;;  %413 = vmatprep.subr.mxu1 %v496_v0 }
  0x24   :  { %379 = vmatpush3.msra.mxu0 %v30_v19  ;;  %414 = vmatpush3.msra.mxu1 %v46_v24 }
  0x25   :  { %380 = vmatprep.subr.mxu0 %v496_v0  ;;  %415 = vmatprep.subr.mxu1 %v496_v0 }
  0x26   :  { %381 = vmatpush3.msra.mxu0 %v29_v21  ;;  %416 = vmatpush3.msra.mxu1 %v45_v26 }
  0x27   :  { %382 = vmatprep.subr.mxu0 %v496_v0  ;;  %417 = vmatprep.subr.mxu1 %v496_v0 }
  0x28   :  { %383 = vmatpush3.msra.mxu0 %v28_v23  ;;  %418 = vmatpush3.msra.mxu1 %v44_v28 }
  0x29   :  { %384 = vmatprep.subr.mxu0 %v496_v0  ;;  %419 = vmatprep.subr.mxu1 %v496_v0 }
  0x2a   :  { %385 = vmatpush3.msra.mxu0 %v27_v25  ;;  %420 = vmatpush3.msra.mxu1 %v43_v31 }
  0x2b   :  { %386 = vmatprep.subr.mxu0 %v496_v0  ;;  %421 = vmatprep.subr.mxu1 %v496_v0 }
  0x2c   :  { %387 = vmatpush3.msra.mxu0 %v26_v27  ;;  %422 = vmatpush3.msra.mxu1 %v42_v32 }
  0x2d   :  { %388 = vmatprep.subr.mxu0 %v496_v0  ;;  %423 = vmatprep.subr.mxu1 %v496_v0 }
  0x2e   :  { %389 = vmatpush3.msra.mxu0 %v25_v29  ;;  %424 = vmatpush3.msra.mxu1 %v41_v33 }
  0x2f   :  { %391 = vmatmul.mubr.f32.vlgmr.msra.gmra.mxu0 %v74_v30  ;;  %428 = vmatprep.subr.mxu0 %v496_v0 }
  0x30   :  { %460 = vmatprep.mubr.msk.f32.mxu0 %vm497_vm0, %v496_v0  ;;  %429 = vmatpush3.msra.mxu0 %v72_v34 }
  0x31   :  { %430 = vmatprep.subr.mxu0 %v496_v0 }
  0x32   :  { %431 = vmatpush3.msra.mxu0 %v71_v35 }
  0x33   :  { %432 = vmatprep.subr.mxu0 %v496_v0 }
  0x34   :  { %433 = vmatpush3.msra.mxu0 %v70_v36 }
  0x35   :  { %434 = vmatprep.subr.mxu0 %v496_v0 }
  0x36   :  { %435 = vmatpush3.msra.mxu0 %v69_v37 }
  0x37   :  { %436 = vmatprep.subr.mxu0 %v496_v0 }
  0x38   :  { %437 = vmatpush3.msra.mxu0 %v68_v38 }
  0x39   :  { %438 = vmatprep.subr.mxu0 %v496_v0 }
  0x3a   :  { %439 = vmatpush3.msra.mxu0 %v67_v39 }
  0x3b   :  { %440 = vmatprep.subr.mxu0 %v496_v0 }
  0x3c   :  { %441 = vmatpush3.msra.mxu0 %v66_v40 }
  0x3d   :  { %442 = vmatprep.subr.mxu0 %v496_v0 }
  0x3e   :  { %443 = vmatpush3.msra.mxu0 %v65_v41 }
  0x3f   :  { %444 = vmatprep.subr.mxu0 %v496_v0 }
  0x40   :  { %445 = vmatpush3.msra.mxu0 %v64_v42 }
  0x41   :  { %446 = vmatprep.subr.mxu0 %v496_v0 }
  0x42   :  { %447 = vmatpush3.msra.mxu0 %v63_v43 }
  0x43   :  { %448 = vmatprep.subr.mxu0 %v496_v0 }
  0x44   :  { %449 = vmatpush3.msra.mxu0 %v62_v44 }
  0x45   :  { %450 = vmatprep.subr.mxu0 %v496_v0 }
  0x46   :  { %451 = vmatpush3.msra.mxu0 %v61_v45 }
  0x47   :  { %452 = vmatprep.subr.mxu0 %v496_v0 }
  0x48   :  { %453 = vmatpush3.msra.mxu0 %v60_v46 }
  0x49   :  { %454 = vmatprep.subr.mxu0 %v496_v0 }
  0x4a   :  { %455 = vmatpush3.msra.mxu0 %v59_v52 }
  0x4b   :  { %456 = vmatprep.subr.mxu0 %v496_v0 }
  0x4c   :  { %457 = vmatpush3.msra.mxu0 %v58_v53 }
  0x4d   :  { %458 = vmatprep.subr.mxu0 %v496_v0  ;;  %v297_v0 = vsel %vm294_vm2, 16, %v296_v3 }
  0x4e   :  { %459 = vmatpush3.msra.mxu0 %v57_v54 }
  0xef   :  { %v141_v48 = vpop.f32.mrf.mxu0 }
  0xf0   :  { %v142_v49 = vadd.f32 %v141_v48, %v73_v47 }
  0xf1   :  { %v392_v50 = vpop.f32.mrf.mxu0 }
  0xf2   :  { %v145_v51 = vmax.f32 %v142_v49, 0.0 }
  0xf4   :  { %426 = vmatmul.mubr.f32.vlgmr.msra.gmra.mxu1 %v145_v51 }
 0x1b4   :  { %v215_v56 = vpop.f32.mrf.mxu1 }
 0x1b5   :  { %v216_v57 = vadd.f32 %v215_v56, %v147_v55 }
 0x1b6   :  { %v427_v58 = vpop.f32.mrf.mxu1 }
 0x1b7   :  { %v219_v59 = vmax.f32 %v216_v57, 0.0 }
 0x1b9   :  { %461 = vmatmul.mubr.f32.vlgmr.msra.gmra.mxu0 %v219_v59 }
 0x279   :  { %v288_v63 = vpop.f32.mrf.mxu0 }
 0x27a   :  { %v289_v1 = vadd.f32 %v288_v63, %v220_v62 }
 0x27b   :  { %v462_v4 = vpop.f32.mrf.mxu0 }
 0x27c   :  { %v463_v5 = vtrunc.f32 %v289_v1 }
 0x27e   :  { %v464_v6 = vcvt.f32.s32 %v463_v5 }
 0x280   :  { %vm299_vm3 = vcmp.gt.s32.totalorder %v464_v6, %v297_v0 }
 0x281   :  { %v300_v7 = vsel %vm299_vm3, %v464_v6, %v297_v0 }
 0x282   :  { %301 = vst [vmem:[%s579_s2] sm:$0x1] %v300_v7 }
 0x283   :  { %306 = vsyncpa [#allocation3], 1 }

</bundles_post_ra>
